<compile_context>
chip_gen: v7x
topology: tpu7x:2x2x1
jax: 0.10.0
libtpu: 0.0.40
codegen_flags: <defaults>
</compile_context>

<pallas_src>
import jax
import jax.numpy as jnp
from jax.experimental import pallas as pl
from jax.experimental.pallas import tpu as pltpu

_LANE = 128     # lane width (last dim)
_SUBLANE = 8    # f32 sublane width (second-to-last dim)


def _round_up(a, b):
    return (a + b - 1) // b * b


def _pad2(a, rows, cols):
    return jnp.pad(a, ((0, rows - a.shape[0]), (0, cols - a.shape[1])))


def _gru_mirrored_kernel(x_ref, h_ref, wcat_ref, uz_ref, uh_ref, bcat_ref,
                         out_ref):
    d = out_ref.shape[1]

    x = x_ref[...]                       # bf16 [tile_n, K_pad]
    h = h_ref[...]                       # f32  [tile_n, D_pad]
    h_bf = h.astype(jnp.bfloat16)

    # Fused x-side matmul: x @ [Wz | Wh]  -> [tile_n, 2*D_pad], f32 accumulate.
    xw = jnp.dot(x, wcat_ref[...], preferred_element_type=jnp.float32)
    xw = xw + bcat_ref[...]              # bias broadcast (bz | bh), f32

    # Update gate: sigmoid(x@Wz + h@Uz + bz)
    z_pre = xw[:, :d] + jnp.dot(h_bf, uz_ref[...],
                                preferred_element_type=jnp.float32)
    update = jax.nn.sigmoid(z_pre)

    # Reset gate: the reference forward calls self.update again, so
    # reset == update (bit-identical inputs/params); reuse it directly.
    rh = (update * h).astype(jnp.bfloat16)

    # Candidate: tanh(x@Wh + (reset*h)@Uh + bh)
    hcap_pre = xw[:, d:] + jnp.dot(rh, uh_ref[...],
                                   preferred_element_type=jnp.float32)
    h_cap = jnp.tanh(hcap_pre)

    # (one - update) * h + update * h_cap  ==  h + update * (h_cap - h)
    out_ref[...] = h + update * (h_cap - h)


def gru_mirrored(x, h, params, *, tile_n=512):
    """x: [N, input_dim] f32, h: [N, output_dim] f32 -> [N, output_dim] f32."""
    N, K = x.shape
    D = h.shape[1]

    # Pad feature dims to lane width, rows to sublane width / tile size.
    K_pad = _round_up(max(K, _LANE), _LANE)
    D_pad = _round_up(max(D, _LANE), _LANE)
    n8 = _round_up(N, _SUBLANE)
    tile_n = min(_round_up(tile_n, _SUBLANE), n8)
    N_pad = _round_up(n8, tile_n)
    grid = (N_pad // tile_n,)

    # Pack & pad parameters.  Weights as bf16 (MXU-native, half the VMEM
    # residency and HBM bytes); bias stays f32 (added post-accumulation).
    wz = _pad2(params["Wz"], K_pad, D_pad)
    wh = _pad2(params["Wh"], K_pad, D_pad)
    w_cat = jnp.concatenate([wz, wh], axis=1).astype(jnp.bfloat16)  # [K_pad, 2*D_pad]
    uz = _pad2(params["Uz"], D_pad, D_pad).astype(jnp.bfloat16)
    uh = _pad2(params["Uh"], D_pad, D_pad).astype(jnp.bfloat16)
    bz = _pad2(params["bz"], 1, D_pad)
    bh = _pad2(params["bh"], 1, D_pad)
    b_cat = jnp.concatenate([bz, bh], axis=1).astype(jnp.float32)   # [1, 2*D_pad]

    x_p = _pad2(x, N_pad, K_pad).astype(jnp.bfloat16)
    h_p = _pad2(h, N_pad, D_pad).astype(jnp.float32)

    flops = 2 * N_pad * K_pad * (2 * D_pad) + 2 * 2 * N_pad * D_pad * D_pad
    transcendentals = 2 * N_pad * D_pad
    bytes_accessed = (x_p.size * 2 + h_p.size * 4 + w_cat.size * 2
                      + uz.size * 2 + uh.size * 2 + b_cat.size * 4
                      + N_pad * D_pad * 4)

    out = pl.pallas_call(
        _gru_mirrored_kernel,
        out_shape=jax.ShapeDtypeStruct((N_pad, D_pad), jnp.float32),
        grid=grid,
        in_specs=[
            pl.BlockSpec((tile_n, K_pad), lambda i: (i, 0)),      # x tile
            pl.BlockSpec((tile_n, D_pad), lambda i: (i, 0)),      # h tile
            pl.BlockSpec((K_pad, 2 * D_pad), lambda i: (0, 0)),   # Wz|Wh (resident)
            pl.BlockSpec((D_pad, D_pad), lambda i: (0, 0)),       # Uz (resident)
            pl.BlockSpec((D_pad, D_pad), lambda i: (0, 0)),       # Uh (resident)
            pl.BlockSpec((1, 2 * D_pad), lambda i: (0, 0)),       # bz|bh (resident)
        ],
        out_specs=pl.BlockSpec((tile_n, D_pad), lambda i: (i, 0)),
        compiler_params=pltpu.CompilerParams(
            dimension_semantics=("parallel",),          # megacore on v7x
            vmem_limit_bytes=64 * 1024 * 1024,          # fits v5e/v6e/v7x
        ),
        cost_estimate=pl.CostEstimate(
            flops=flops,
            transcendentals=transcendentals,
            bytes_accessed=bytes_accessed,
        ),
    )(x_p, h_p, w_cat, uz, uh, b_cat)

    return out[:N, :D]


def gru_mirrored_ref(x, h, params, *, matmul_dtype=jnp.float32):
    """Pure-JAX reference mirroring the PyTorch forward semantics.

    With matmul_dtype=bf16 it emulates the kernel's MXU numerics
    (bf16 inputs, f32 accumulation)."""
    def mm(a, b):
        return jnp.dot(a.astype(matmul_dtype), b.astype(matmul_dtype),
                       preferred_element_type=jnp.float32)
    z = jax.nn.sigmoid(mm(x, params["Wz"]) + mm(h, params["Uz"]) + params["bz"])
    reset = z  # reference forward re-calls self.update -> identical result
    h_cap = jnp.tanh(mm(x, params["Wh"]) + mm(reset * h, params["Uh"])
                     + params["bh"])
    return (1.0 - z) * h + z * h_cap


def init_params(key, input_dim, output_dim):
    ks = jax.random.split(key, 6)
    scale_in = 1.0 / jnp.sqrt(jnp.float32(input_dim))
    scale_out = 1.0 / jnp.sqrt(jnp.float32(output_dim))
    params = {
        # update gate params (also used for "reset" per the reference forward)
        "Wz": jax.random.normal(ks[0], (input_dim, output_dim), jnp.float32) * scale_in,
        "Uz": jax.random.normal(ks[1], (output_dim, output_dim), jnp.float32) * scale_out,
        "bz": jax.random.normal(ks[2], (1, output_dim), jnp.float32) * 0.1,
        # htilda (candidate) gate params
        "Wh": jax.random.normal(ks[3], (input_dim, output_dim), jnp.float32) * scale_in,
        "Uh": jax.random.normal(ks[4], (output_dim, output_dim), jnp.float32) * scale_out,
        "bh": jax.random.normal(ks[5], (1, output_dim), jnp.float32) * 0.1,
    }
    # TODO(synk): self.reset gate parameters exist in __init__ but are never
    # used in forward (the reference calls self.update twice); they are
    # intentionally not materialized.  The all-ones `self.one` buffer is
    # folded into the blend arithmetic (h + z*(h_cap - h)) inside the kernel.
    return params


if __name__ == "__main__":
    N, input_dim, output_dim = 8, 16, 32

    key = jax.random.PRNGKey(0)
    kx, kh, kp = jax.random.split(key, 3)

    x = jax.random.normal(kx, (N, input_dim), jnp.float32)
    h = jax.random.normal(kh, (N, output_dim), jnp.float32)
    params = init_params(kp, input_dim, output_dim)

    out = gru_mirrored(x, h, params)
    out = jax.block_until_ready(out)
    assert out.shape == (N, output_dim)

    # Tight check against a reference that matches the kernel's bf16-input /
    # f32-accumulate MXU numerics.
    ref_bf16 = gru_mirrored_ref(x, h, params, matmul_dtype=jnp.bfloat16)
    assert jnp.allclose(out, ref_bf16, atol=1e-2, rtol=1e-2), \
        "mismatch vs bf16-matched reference"

    # Sanity check against the full-f32 reference (loose tolerance: bf16
    # matmul inputs in the kernel).
    ref_f32 = gru_mirrored_ref(x, h, params, matmul_dtype=jnp.float32)
    assert jnp.allclose(out, ref_f32, atol=1e-1, rtol=1e-1), \
        "mismatch vs f32 reference"

    print("KERNEL_OK")
</pallas_src>

<mosaic_0001>
module attributes {stable_mosaic.version = 11 : i64} {
  func.func @_gru_mirrored_kernel(%arg0: i32, %arg1: memref<8x128xbf16, #tpu.memory_space<vmem>>, %arg2: memref<8x128xf32, #tpu.memory_space<vmem>>, %arg3: memref<128x256xbf16, #tpu.memory_space<vmem>>, %arg4: memref<128x128xbf16, #tpu.memory_space<vmem>>, %arg5: memref<128x128xbf16, #tpu.memory_space<vmem>>, %arg6: memref<1x256xf32, #tpu.memory_space<vmem>>, %arg7: memref<8x128xf32, #tpu.memory_space<vmem>>) attributes {dimension_semantics = [#tpu.dimension_semantics<parallel>], iteration_bounds = array<i64: 1>, scalar_prefetch = 0 : i64, scratch_operands = 0 : i64, tpu.core_type = #tpu.core_type<tc>, window_params = [{transform_indices = @transform_0, window_bounds = array<i64: 8, 128>}, {transform_indices = @transform_1, window_bounds = array<i64: 8, 128>}, {pipeline_mode = #tpu.pipeline_mode<synchronous>, transform_indices = @transform_2, window_bounds = array<i64: 128, 256>}, {pipeline_mode = #tpu.pipeline_mode<synchronous>, transform_indices = @transform_3, window_bounds = array<i64: 128, 128>}, {pipeline_mode = #tpu.pipeline_mode<synchronous>, transform_indices = @transform_4, window_bounds = array<i64: 128, 128>}, {pipeline_mode = #tpu.pipeline_mode<synchronous>, transform_indices = @transform_5, window_bounds = array<i64: 1, 256>}, {transform_indices = @transform_6, window_bounds = array<i64: 8, 128>}]} {
    %c0 = arith.constant 0 : index
    %c0_0 = arith.constant 0 : index
    %0 = vector.load %arg1[%c0, %c0_0] : memref<8x128xbf16, #tpu.memory_space<vmem>>, vector<8x128xbf16>
    %c0_1 = arith.constant 0 : index
    %c0_2 = arith.constant 0 : index
    %1 = vector.load %arg2[%c0_1, %c0_2] : memref<8x128xf32, #tpu.memory_space<vmem>>, vector<8x128xf32>
    %2 = arith.truncf %1 : vector<8x128xf32> to vector<8x128xbf16>
    %c0_3 = arith.constant 0 : index
    %c0_4 = arith.constant 0 : index
    %3 = vector.load %arg3[%c0_3, %c0_4] : memref<128x256xbf16, #tpu.memory_space<vmem>>, vector<128x256xbf16>
    %cst = arith.constant dense<0.000000e+00> : vector<8x256xf32>
    %4 = tpu.matmul %0, %3, %cst {dimension_numbers = #tpu.dot_dimension_numbers<[1], [0], [0], [1], [0, 0, 1, 1], [], []>} : vector<8x128xbf16>, vector<128x256xbf16>, vector<8x256xf32> -> vector<8x256xf32>
    %c0_5 = arith.constant 0 : index
    %c0_6 = arith.constant 0 : index
    %5 = vector.load %arg6[%c0_5, %c0_6] : memref<1x256xf32, #tpu.memory_space<vmem>>, vector<1x256xf32>
    %6 = vector.broadcast %5 : vector<1x256xf32> to vector<8x256xf32>
    %7 = arith.addf %4, %6 : vector<8x256xf32>
    %8 = vector.extract_strided_slice %7 {offsets = [0, 0], sizes = [8, 128], strides = [1, 1]} : vector<8x256xf32> to vector<8x128xf32>
    %c0_7 = arith.constant 0 : index
    %c0_8 = arith.constant 0 : index
    %9 = vector.load %arg4[%c0_7, %c0_8] : memref<128x128xbf16, #tpu.memory_space<vmem>>, vector<128x128xbf16>
    %cst_9 = arith.constant dense<0.000000e+00> : vector<8x128xf32>
    %10 = tpu.matmul %2, %9, %cst_9 {dimension_numbers = #tpu.dot_dimension_numbers<[1], [0], [0], [1], [0, 0, 1, 1], [], []>} : vector<8x128xbf16>, vector<128x128xbf16>, vector<8x128xf32> -> vector<8x128xf32>
    %11 = arith.addf %8, %10 : vector<8x128xf32>
    %12 = arith.negf %11 : vector<8x128xf32>
    %13 = math.exp %12 : vector<8x128xf32>
    %cst_10 = arith.constant 1.000000e+00 : f32
    %14 = vector.broadcast %cst_10 : f32 to vector<8x128xf32>
    %15 = arith.addf %14, %13 : vector<8x128xf32>
    %16 = arith.divf %14, %15 : vector<8x128xf32>
    %17 = arith.mulf %16, %1 : vector<8x128xf32>
    %18 = arith.truncf %17 : vector<8x128xf32> to vector<8x128xbf16>
    %19 = vector.extract_strided_slice %7 {offsets = [0, 128], sizes = [8, 128], strides = [1, 1]} : vector<8x256xf32> to vector<8x128xf32>
    %c0_11 = arith.constant 0 : index
    %c0_12 = arith.constant 0 : index
    %20 = vector.load %arg5[%c0_11, %c0_12] : memref<128x128xbf16, #tpu.memory_space<vmem>>, vector<128x128xbf16>
    %cst_13 = arith.constant dense<0.000000e+00> : vector<8x128xf32>
    %21 = tpu.matmul %18, %20, %cst_13 {dimension_numbers = #tpu.dot_dimension_numbers<[1], [0], [0], [1], [0, 0, 1, 1], [], []>} : vector<8x128xbf16>, vector<128x128xbf16>, vector<8x128xf32> -> vector<8x128xf32>
    %22 = arith.addf %19, %21 : vector<8x128xf32>
    %23 = math.tanh %22 : vector<8x128xf32>
    %24 = arith.subf %23, %1 : vector<8x128xf32>
    %25 = arith.mulf %16, %24 : vector<8x128xf32>
    %26 = arith.addf %1, %25 : vector<8x128xf32>
    %c0_14 = arith.constant 0 : index
    %c0_15 = arith.constant 0 : index
    %27 = vector.load %arg7[%c0_14, %c0_15] : memref<8x128xf32, #tpu.memory_space<vmem>>, vector<8x128xf32>
    tpu.vector_store %arg7[%c0_14, %c0_15], %26 {strides = array<i32>} : memref<8x128xf32, #tpu.memory_space<vmem>>, vector<8x128xf32>,
    return
  }
  func.func @transform_0(%arg0: i32) -> (i32, i32) {
    %c0_i32 = arith.constant 0 : i32
    %c0_i32_0 = arith.constant 0 : i32
    return %arg0, %c0_i32 : i32, i32
  }
  func.func @transform_1(%arg0: i32) -> (i32, i32) {
    %c0_i32 = arith.constant 0 : i32
    %c0_i32_0 = arith.constant 0 : i32
    return %arg0, %c0_i32 : i32, i32
  }
  func.func @transform_2(%arg0: i32) -> (i32, i32) {
    %c0_i32 = arith.constant 0 : i32
    %c0_i32_0 = arith.constant 0 : i32
    %c0_i32_1 = arith.constant 0 : i32
    return %c0_i32, %c0_i32_0 : i32, i32
  }
  func.func @transform_3(%arg0: i32) -> (i32, i32) {
    %c0_i32 = arith.constant 0 : i32
    %c0_i32_0 = arith.constant 0 : i32
    %c0_i32_1 = arith.constant 0 : i32
    return %c0_i32, %c0_i32_0 : i32, i32
  }
  func.func @transform_4(%arg0: i32) -> (i32, i32) {
    %c0_i32 = arith.constant 0 : i32
    %c0_i32_0 = arith.constant 0 : i32
    %c0_i32_1 = arith.constant 0 : i32
    return %c0_i32, %c0_i32_0 : i32, i32
  }
  func.func @transform_5(%arg0: i32) -> (i32, i32) {
    %c0_i32 = arith.constant 0 : i32
    %c0_i32_0 = arith.constant 0 : i32
    %c0_i32_1 = arith.constant 0 : i32
    return %c0_i32, %c0_i32_0 : i32, i32
  }
  func.func @transform_6(%arg0: i32) -> (i32, i32) {
    %c0_i32 = arith.constant 0 : i32
    %c0_i32_0 = arith.constant 0 : i32
    return %arg0, %c0_i32 : i32, i32
  }
}

</mosaic_0001>

<bundles_post_ra>
// kernel: tpu_custom_call.1
= control target key start
LH: loop header
LB: loop body
LE: loop exit
PB: predicated region body
PF: predicated region fallthrough
CT: control target
= control target key end

     0   :  { %11 = vsyncpa [#allocation3], 0  ;;  %s989_s0 = inlined_call_operand.hbm [shape: bf16[8,128], index: 0, kind: input, shape index: {}]   ;;  %s990_s1 = inlined_call_operand.hbm [shape: f32[8,128], index: 1, kind: input, shape index: {}]   ;;  %s991_s2 = inlined_call_operand.hbm [shape: bf16[128,256], index: 2, kind: input, shape index: {}]   ;;  %s992_s3 = inlined_call_operand.hbm [shape: bf16[128,128], index: 3, kind: input, shape index: {}]   ;;  %s993_s4 = inlined_call_operand.hbm [shape: bf16[128,128], index: 4, kind: input, shape index: {}]   ;;  %s994_s5 = inlined_call_operand.hbm [shape: f32[1,256], index: 5, kind: input, shape index: {}]   ;;  %s995_s6 = inlined_call_operand.hbm [shape: f32[8,128], index: 6, kind: output, shape index: {}]  }
   0x1   :  { %12 = vsyncpa [#allocation6], 0 }
   0x2   :  { %13 = vsyncpa [#allocation9], 0 }
   0x3   :  { %14 = vsyncpa [#allocation12], 0 }
   0x4   :  { %15 = vsyncpa [#allocation4], 0  ;;  %s809_s21 = smov [#allocation5]   ;;  %s810_s23 = smov [#allocation8]  }
   0x5   :  { %s32_s22 = sshll.u32 %s809_s21, 4  ;;  %s53_s24 = sshll.u32 %s810_s23, 4  ;;  %s33_s22 = int_to_ptr.vmem [resolvable:$true] %s32_s22  ;;  %s858_s24 = int_to_ptr.vmem [resolvable:$true] %s53_s24 }
   0x6   :  { %s645_s27 = scalar_lea.hbm %s990_s1, 128 }
   0x7   :  { %p646_p0 = scmp.ne.s32.totalorder %s990_s1, %s645_s27  ;;  %p649_p1 = scmp.lt.u32.totalorder %s645_s27, %s990_s1 }
   0x9   :  { %p651_p2 = pnand %p649_p1, %p646_p0 }
   0xb   :  { %654 = shalt.err (!%p651_p2)
}
   0xc   :  { %s655_s8 = scalar_lea.vmem %s33_s22, 128  ;;  %p660_p4 = scmp.lt.s32.totalorder %s33_s22, %s33_s22 }
   0xd   :  { %p656_p3 = scmp.ne.s32.totalorder %s33_s22, %s655_s8  ;;  %p661_p5 = scmp.lt.s32.totalorder %s655_s8, %s655_s8 }
   0xf   :  { %p662_p6 = por %p661_p5, %p660_p4 }
  0x11   :  { %p663_p7 = pnand %p662_p6, %p656_p3 }
  0x13   :  { %666 = shalt.err (!%p663_p7)
}
  0x14   :  { %35 = dma.hbm_to_vmem [thread:$0]  %s990_s1, 128, %s33_s22, [#allocation6]  }
  0x15   :  { %s667_s13 = scalar_lea.hbm %s992_s3, 1024 }
  0x16   :  { %p668_p8 = scmp.ne.s32.totalorder %s992_s3, %s667_s13  ;;  %p671_p9 = scmp.lt.u32.totalorder %s667_s13, %s992_s3 }
  0x18   :  { %p673_p10 = pnand %p671_p9, %p668_p8 }
  0x1a   :  { %676 = shalt.err (!%p673_p10)
}
  0x1b   :  { %s677_s18 = scalar_lea.vmem %s858_s24, 1024  ;;  %p682_p12 = scmp.lt.s32.totalorder %s858_s24, %s858_s24 }
  0x1c   :  { %p678_p11 = scmp.ne.s32.totalorder %s858_s24, %s677_s18  ;;  %p683_p13 = scmp.lt.s32.totalorder %s677_s18, %s677_s18 }
  0x1e   :  { %p684_p0 = por %p683_p13, %p682_p12 }
  0x20   :  { %p685_p1 = pnand %p684_p0, %p678_p11 }
  0x22   :  { %688 = shalt.err (!%p685_p1)
}
  0x23   :  { %s811_s1 = smov 64   ;;  %s812_s19 = smov 4  }
  0x24   :  { %59 = dma.hbm_to_vmem [thread:$0]  %s992_s3, 1024, %s858_s24, [#allocation9], %s811_s1, %s811_s1, %s812_s19  }
  0x25   :  { %s813_s22 = smov [#allocation2]   ;;  %s814_s25 = smov [#allocation7]  }
  0x26   :  { %s22_s23 = sshll.u32 %s813_s22, 4  ;;  %s41_s26 = sshll.u32 %s814_s25, 4  ;;  %s23_s23 = int_to_ptr.vmem [resolvable:$true] %s22_s23  ;;  %s892_s26 = int_to_ptr.vmem [resolvable:$true] %s41_s26 }
  0x27   :  { %s689_s29 = scalar_lea.hbm %s989_s0, 64 }
  0x28   :  { %p690_p2 = scmp.ne.s32.totalorder %s989_s0, %s689_s29  ;;  %p693_p3 = scmp.lt.u32.totalorder %s689_s29, %s989_s0 }
  0x2a   :  { %p695_p4 = pnand %p693_p3, %p690_p2 }
  0x2c   :  { %698 = shalt.err (!%p695_p4)
}
  0x2d   :  { %s699_s3 = scalar_lea.vmem %s23_s23, 64  ;;  %p704_p6 = scmp.lt.s32.totalorder %s23_s23, %s23_s23 }
  0x2e   :  { %p700_p5 = scmp.ne.s32.totalorder %s23_s23, %s699_s3  ;;  %p705_p7 = scmp.lt.s32.totalorder %s699_s3, %s699_s3 }
  0x30   :  { %p706_p8 = por %p705_p7, %p704_p6 }
  0x32   :  { %p707_p9 = pnand %p706_p8, %p700_p5 }
  0x34   :  { %710 = shalt.err (!%p707_p9)
}
  0x35   :  { %25 = dma.hbm_to_vmem [thread:$0]  %s989_s0, 64, %s23_s23, [#allocation3]  }
  0x36   :  { %s711_s13 = scalar_lea.hbm %s991_s2, 2048 }
  0x37   :  { %p712_p10 = scmp.ne.s32.totalorder %s991_s2, %s711_s13  ;;  %p715_p11 = scmp.lt.u32.totalorder %s711_s13, %s991_s2 }
  0x39   :  { %p717_p12 = pnand %p715_p11, %p712_p10 }
  0x3b   :  { %720 = shalt.err (!%p717_p12)
}
  0x3c   :  { %s721_s18 = scalar_lea.vmem %s892_s26, 2048  ;;  %p726_p0 = scmp.lt.s32.totalorder %s892_s26, %s892_s26 }
  0x3d   :  { %p722_p13 = scmp.ne.s32.totalorder %s892_s26, %s721_s18  ;;  %p727_p1 = scmp.lt.s32.totalorder %s721_s18, %s721_s18 }
  0x3f   :  { %p728_p2 = por %p727_p1, %p726_p0 }
  0x41   :  { %p729_p3 = pnand %p728_p2, %p722_p13 }
  0x43   :  { %732 = shalt.err (!%p729_p3)
}
  0x44   :  { %s815_s0 = smov 128   ;;  %s816_s20 = smov 8  }
  0x45   :  { %47 = dma.hbm_to_vmem [thread:$0]  %s991_s2, 2048, %s892_s26, [#allocation6], %s815_s0, %s815_s0, %s816_s20  }
  0x46   :  { %s817_s23 = smov [#allocation10]   ;;  %s818_s27 = smov [#allocation11]  }
  0x47   :  { %s65_s25 = sshll.u32 %s817_s23, 4  ;;  %s78_s28 = sshll.u32 %s818_s27, 4  ;;  %s66_s25 = int_to_ptr.vmem [resolvable:$true] %s65_s25  ;;  %s79_s28 = int_to_ptr.vmem [resolvable:$true] %s78_s28 }
  0x48   :  { %s733_s7 = scalar_lea.hbm %s993_s4, 1024 }
  0x49   :  { %p734_p4 = scmp.ne.s32.totalorder %s993_s4, %s733_s7  ;;  %p737_p5 = scmp.lt.u32.totalorder %s733_s7, %s993_s4 }
  0x4b   :  { %p739_p6 = pnand %p737_p5, %p734_p4 }
  0x4d   :  { %742 = shalt.err (!%p739_p6)
}
  0x4e   :  { %s743_s2 = scalar_lea.vmem %s66_s25, 1024  ;;  %p748_p8 = scmp.lt.s32.totalorder %s66_s25, %s66_s25 }
  0x4f   :  { %p744_p7 = scmp.ne.s32.totalorder %s66_s25, %s743_s2  ;;  %p749_p9 = scmp.lt.s32.totalorder %s743_s2, %s743_s2 }
  0x51   :  { %p750_p10 = por %p749_p9, %p748_p8 }
  0x53   :  { %p751_p11 = pnand %p750_p10, %p744_p7 }
  0x55   :  { %754 = shalt.err (!%p751_p11)
}
  0x56   :  { %71 = dma.hbm_to_vmem [thread:$0]  %s993_s4, 1024, %s66_s25, [#allocation9], %s811_s1, %s811_s1, %s812_s19  }
  0x57   :  { %s755_s13 = scalar_lea.hbm %s994_s5, 32 }
  0x58   :  { %p756_p12 = scmp.ne.s32.totalorder %s994_s5, %s755_s13  ;;  %p759_p13 = scmp.lt.u32.totalorder %s755_s13, %s994_s5 }
  0x5a   :  { %p761_p0 = pnand %p759_p13, %p756_p12 }
  0x5c   :  { %764 = shalt.err (!%p761_p0)
}
  0x5d   :  { %s765_s18 = scalar_lea.vmem %s79_s28, 32  ;;  %p770_p2 = scmp.lt.s32.totalorder %s79_s28, %s79_s28 }
  0x5e   :  { %p766_p1 = scmp.ne.s32.totalorder %s79_s28, %s765_s18  ;;  %p771_p3 = scmp.lt.s32.totalorder %s765_s18, %s765_s18 }
  0x60   :  { %p772_p4 = por %p771_p3, %p770_p2 }
  0x62   :  { %p773_p5 = pnand %p772_p4, %p766_p1 }
  0x64   :  { %776 = shalt.err (!%p773_p5)
}
  0x65   :  { %81 = dma.hbm_to_vmem [thread:$0]  %s994_s5, 32, %s79_s28, [#allocation12]  }
  0x66   :  { %799 = dma.done.wait [#allocation3], 64  }
  0x67   :  { %800 = vsyncadd [#allocation3], 4294967232 }
  0x68   :  { %801 = dma.done.wait [#allocation6], 2176  }
  0x69   :  { %802 = vsyncadd [#allocation6], 4294965120 }
  0x6a   :  { %803 = dma.done.wait [#allocation9], 2048  }
  0x6b   :  { %804 = vsyncadd [#allocation9], 4294965248 }
  0x6c   :  { %805 = dma.done.wait [#allocation12], 32  }
  0x6d   :  { %806 = vsyncadd [#allocation12], 4294967264  ;;  %v819_v0 = vmov 0.0   ;;  %vm820_vm0 = vmmov 0   ;;  %v821_v1 = vmov 0   ;;  %v601_v3 = vld [vmem:[#allocation8] sm:$0xff]   ;;  %v122_v29 = vlaneseq }
  0x6e   :  { %545 = vmatprep.subr.bf16.mxu1 %v819_v0  ;;  %561 = vmatprep.mubr.msk.bf16.mxu1 %vm820_vm0, %v819_v0  ;;  %v599_v2 = vld [vmem:[#allocation7 + $0x4] ss:$8 sps:$4 sm:$0xff]   ;;  %v602_v4 = vld [vmem:[#allocation7] ss:$8 sps:$4 sm:$0xff]   ;;  %v603_v5 = vld [vmem:[#allocation7 + $0x14] ss:$8 sps:$4 sm:$0xff]  }
  0x6f   :  { %244 = vmatprep.mubr.bf16.mxu0 %v821_v1  ;;  %212 = vmatprep.subr.bf16.mxu0 %v599_v2  ;;  %v605_v6 = vld [vmem:[#allocation8 + $0x8] sm:$0xff]   ;;  %v606_v7 = vld [vmem:[#allocation7 + $0x10] ss:$8 sps:$4 sm:$0xff]   ;;  %v611_v11 = vld [vmem:[#allocation7 + $0x34] ss:$8 sps:$4 sm:$0xff]   ;;  %v123_v30 = vshrl.u32 %v122_v29, 7 }
  0x70   :  { %546 = vmatpush3.bf16.msra.mxu1 %v601_v3  ;;  %213 = vmatpush1.bf16.msra.mxu0 %v602_v4  ;;  %v607_v8 = vld [vmem:[#allocation7 + $0x24] ss:$8 sps:$4 sm:$0xff]   ;;  %v609_v9 = vld [vmem:[#allocation8 + $0x10] sm:$0xff]   ;;  %v610_v10 = vld [vmem:[#allocation7 + $0x20] ss:$8 sps:$4 sm:$0xff]   ;;  %s822_s5 = smov [#allocation13]  }
  0x71   :  { %547 = vmatprep.subr.bf16.mxu1 %v819_v0  ;;  %214 = vmatprep.subr.bf16.mxu0 %v603_v5  ;;  %v613_v12 = vld [vmem:[#allocation8 + $0x18] sm:$0xff]   ;;  %v615_v14 = vld [vmem:[#allocation7 + $0x44] ss:$8 sps:$4 sm:$0xff]   ;;  %v618_v16 = vld [vmem:[#allocation7 + $0x40] ss:$8 sps:$4 sm:$0xff]   ;;  %v128_v32 = vsub.s32 1, %v123_v30 }
  0x72   :  { %v614_v13 = vld [vmem:[#allocation7 + $0x30] ss:$8 sps:$4 sm:$0xff]   ;;  %v617_v15 = vld [vmem:[#allocation8 + $0x20] sm:$0xff]   ;;  %v619_v17 = vld [vmem:[#allocation7 + $0x54] ss:$8 sps:$4 sm:$0xff]   ;;  %v124_v42 = vsub.s32 0, %v123_v30 }
  0x73   :  { %v621_v18 = vld [vmem:[#allocation8 + $0x28] sm:$0xff]   ;;  %v622_v19 = vld [vmem:[#allocation7 + $0x50] ss:$8 sps:$4 sm:$0xff]   ;;  %v627_v23 = vld [vmem:[#allocation7 + $0x74] ss:$8 sps:$4 sm:$0xff]   ;;  %s482_s19 = sshll.u32 %s822_s5, 4  ;;  %s483_s19 = int_to_ptr.vmem [resolvable:$true] %s482_s19 }
  0x74   :  { %548 = vmatpush3.bf16.msra.mxu1 %v605_v6  ;;  %215 = vmatpush1.bf16.msra.mxu0 %v606_v7  ;;  %v623_v20 = vld [vmem:[#allocation7 + $0x64] ss:$8 sps:$4 sm:$0xff]   ;;  %v625_v21 = vld [vmem:[#allocation8 + $0x30] sm:$0xff]   ;;  %v626_v22 = vld [vmem:[#allocation7 + $0x60] ss:$8 sps:$4 sm:$0xff]   ;;  %s777_s0 = scalar_lea.vmem %s483_s19, 128  ;;  %p782_p7 = scmp.lt.s32.totalorder %s483_s19, %s483_s19 }
  0x75   :  { %549 = vmatprep.subr.bf16.mxu1 %v819_v0  ;;  %216 = vmatprep.subr.bf16.mxu0 %v607_v8  ;;  %v629_v24 = vld [vmem:[#allocation8 + $0x38] sm:$0xff]   ;;  %v101_v28 = vld [vmem:[#allocation2] sm:$0xf]  ;;  %v120_v31 = vld [vmem:[#allocation11] sm:$0x3]  ;;  %p778_p6 = scmp.ne.s32.totalorder %s483_s19, %s777_s0  ;;  %p783_p8 = scmp.lt.s32.totalorder %s777_s0, %s777_s0 }
  0x76   :  { %v959_v25 = vld [vmem:[#allocation5] sm:$0xff]  ;;  %v129_v33 = vrot.slane %v120_v31, %v128_v32  ;;  %v631_v34 = vld [vmem:[#allocation10] sm:$0xff]   ;;  %v632_v35 = vld [vmem:[#allocation10 + $0x8] sm:$0xff]   ;;  %v125_v43 = vrot.slane %v120_v31, %v124_v42 }
  0x77   :  { %v630_v26 = vld [vmem:[#allocation7 + $0x70] ss:$8 sps:$4 sm:$0xff]   ;;  %v103_v27 = vpack.c.bf16 %v959_v25, %v959_v25  ;;  %v635_v38 = vld [vmem:[#allocation10 + $0x20] sm:$0xff]   ;;  %v636_v39 = vld [vmem:[#allocation10 + $0x28] sm:$0xff]   ;;  %p784_p9 = por %p783_p8, %p782_p7 }
  0x78   :  { %550 = vmatpush3.bf16.msra.mxu1 %v609_v9  ;;  %217 = vmatpush1.bf16.msra.mxu0 %v610_v10  ;;  %v633_v36 = vld [vmem:[#allocation10 + $0x10] sm:$0xff]   ;;  %v634_v37 = vld [vmem:[#allocation10 + $0x18] sm:$0xff]  }
  0x79   :  { %551 = vmatprep.subr.bf16.mxu1 %v819_v0  ;;  %218 = vmatprep.subr.bf16.mxu0 %v611_v11  ;;  %v637_v40 = vld [vmem:[#allocation10 + $0x30] sm:$0xff]   ;;  %v638_v41 = vld [vmem:[#allocation10 + $0x38] sm:$0xff]   ;;  %p785_p10 = pnand %p784_p9, %p778_p6 }
  0x7c   :  { %552 = vmatpush3.bf16.msra.mxu1 %v613_v12  ;;  %219 = vmatpush1.bf16.msra.mxu0 %v614_v13 }
  0x7d   :  { %553 = vmatprep.subr.bf16.mxu1 %v819_v0  ;;  %220 = vmatprep.subr.bf16.mxu0 %v615_v14 }
  0x80   :  { %554 = vmatpush3.bf16.msra.mxu1 %v617_v15  ;;  %221 = vmatpush1.bf16.msra.mxu0 %v618_v16 }
  0x81   :  { %555 = vmatprep.subr.bf16.mxu1 %v819_v0  ;;  %222 = vmatprep.subr.bf16.mxu0 %v619_v17 }
  0x84   :  { %556 = vmatpush3.bf16.msra.mxu1 %v621_v18  ;;  %223 = vmatpush1.bf16.msra.mxu0 %v622_v19 }
  0x85   :  { %557 = vmatprep.subr.bf16.mxu1 %v819_v0  ;;  %224 = vmatprep.subr.bf16.mxu0 %v623_v20 }
  0x88   :  { %558 = vmatpush3.bf16.msra.mxu1 %v625_v21  ;;  %225 = vmatpush1.bf16.msra.mxu0 %v626_v22 }
  0x89   :  { %559 = vmatprep.subr.bf16.mxu1 %v819_v0  ;;  %226 = vmatprep.subr.bf16.mxu0 %v627_v23 }
  0x8c   :  { %560 = vmatpush3.bf16.msra.mxu1 %v629_v24  ;;  %227 = vmatpush1.bf16.msra.mxu0 %v630_v26 }
  0x8d   :  { %565 = vmatprep.subr.bf16.mxu0 %v819_v0 }
  0x8f   :  { %562 = vmatmul.mubr.bf16.vlgmr.msra.gmra.mrb[0].mxu1 %v103_v27  ;;  %245 = vmatmul.mubr.bf16.vlgmr.msra.gmra.mrb[0].mxu0 %v101_v28 }
  0x90   :  { %581 = vmatprep.mubr.msk.bf16.mxu0 %vm820_vm0, %v819_v0  ;;  %566 = vmatpush3.bf16.msra.mxu0 %v631_v34 }
  0x91   :  { %567 = vmatprep.subr.bf16.mxu0 %v819_v0 }
  0x94   :  { %568 = vmatpush3.bf16.msra.mxu0 %v632_v35 }
  0x95   :  { %569 = vmatprep.subr.bf16.mxu0 %v819_v0 }
  0x98   :  { %570 = vmatpush3.bf16.msra.mxu0 %v633_v36 }
  0x99   :  { %571 = vmatprep.subr.bf16.mxu0 %v819_v0 }
  0x9c   :  { %572 = vmatpush3.bf16.msra.mxu0 %v634_v37 }
  0x9d   :  { %573 = vmatprep.subr.bf16.mxu0 %v819_v0 }
  0xa0   :  { %574 = vmatpush3.bf16.msra.mxu0 %v635_v38 }
  0xa1   :  { %575 = vmatprep.subr.bf16.mxu0 %v819_v0 }
  0xa4   :  { %576 = vmatpush3.bf16.msra.mxu0 %v636_v39 }
  0xa5   :  { %577 = vmatprep.subr.bf16.mxu0 %v819_v0 }
  0xa8   :  { %578 = vmatpush3.bf16.msra.mxu0 %v637_v40 }
  0xa9   :  { %579 = vmatprep.subr.bf16.mxu0 %v819_v0 }
  0xac   :  { %580 = vmatpush3.bf16.msra.mxu0 %v638_v41 }
 0x162   :  { %v351_v44 = vpop.f32.mrb[0].mxu1  ;;  %v246_v45 = vpop.f32.mrb[0].mxu0 }
 0x163   :  { %v563_v46 = vpop.f32.mrb[1].mxu1  ;;  %v247_v47 = vadd.f32 %v246_v45, %v125_v43  ;;  %v248_v48 = vpop.f32.mrb[1].mxu0 }
 0x164   :  { %v354_v49 = vpop.f32.mrb[2].mxu1  ;;  %v249_v50 = vadd.f32 %v248_v48, %v129_v33  ;;  %v250_v51 = vpop.f32.mrb[2].mxu0 }
 0x165   :  { %v564_v52 = vpop.f32.mrb[3].mxu1  ;;  %v357_v53 = vadd.f32 %v351_v44, %v247_v47  ;;  %v251_v54 = vpop.f32.mrb[3].mxu0 }
 0x167   :  { %v518_v55 = vmul.f32 -1.442695, %v357_v53 }
 0x169   :  { %639 = vpow2.f32 %v518_v55 }
 0x173   :  { %v640_v56 = vpop.eup %639 }
 0x174   :  { %v361_v57 = vadd.f32 1.0, %v640_v56 }
 0x176   :  { %641 = vrcp.f32 %v361_v57 }
 0x180   :  { %v642_v58 = vpop.eup %641 }
 0x181   :  { %v364_v59 = vmul.f32 %v642_v58, %v959_v25 }
 0x183   :  { %v365_v60 = vpack.c.bf16 %v364_v59, %v364_v59 }
 0x185   :  { %582 = vmatmul.mubr.bf16.vlgmr.msra.gmra.mrb[4].mxu0 %v365_v60 }
 0x258   :  { %v464_v61 = vpop.f32.mrb[4].mxu0 }
 0x259   :  { %v470_v62 = vadd.f32 %v464_v61, %v249_v50  ;;  %v583_v63 = vpop.f32.mrb[5].mxu0 }
 0x25a   :  { %v467_v0 = vpop.f32.mrb[6].mxu0 }
 0x25b   :  { %643 = vtanh.f32 %v470_v62  ;;  %v584_v1 = vpop.f32.mrb[7].mxu0 }
 0x265   :  { %v644_v2 = vpop.eup %643 }
 0x266   :  { %v472_v3 = vsub.f32 %v644_v2, %v959_v25 }
 0x268   :  { %v473_v4 = vmul.f32 %v642_v58, %v472_v3 }
 0x26a   :  { %v474_v5 = vadd.f32 %v473_v4, %v959_v25 }
 0x26c   :  { %475 = vst [vmem:[#allocation13] sm:$0xff] %v474_v5 }
 0x26d   :  { %788 = shalt.err (!%p785_p10)
}
 0x26e   :  { %s789_s22 = scalar_lea.hbm %s995_s6, 128 }
 0x26f   :  { %p790_p11 = scmp.ne.s32.totalorder %s995_s6, %s789_s22  ;;  %p793_p12 = scmp.lt.u32.totalorder %s789_s22, %s995_s6 }
 0x271   :  { %p795_p13 = pnand %p793_p12, %p790_p11 }
 0x273   :  { %798 = shalt.err (!%p795_p13)
}
 0x274   :  { %485 = dma.vmem_to_hbm [thread:$0]  %s483_s19, 128, %s995_s6, [#allocation4]  }
 0x275   :  { %807 = dma.done.wait [#allocation4], 128  }
 0x276   :  { %808 = vsyncadd [#allocation4], 4294967168 }
 0x277   :  { %489 = vsyncpa [#allocation3], 1 }
 0x278   :  { %490 = vsyncpa [#allocation6], 1 }
 0x279   :  { %491 = vsyncpa [#allocation9], 1 }
 0x27a   :  { %492 = vsyncpa [#allocation12], 1 }
 0x27b   :  { %493 = vsyncpa [#allocation4], 1 }

</bundles_post_ra>
